<compile_context>
chip_gen: v7x
topology: tpu7x:2x2x1
jax: 0.10.0
libtpu: 0.0.40
codegen_flags: <defaults>
</compile_context>

<pallas_src>
import jax
import jax.numpy as jnp
from jax.experimental import pallas as pl
from jax.experimental.pallas import tpu as pltpu


def _add_kernel(x_ref, y_ref, o_ref):
    # Whole-tile elementwise add on the VPU.
    o_ref[...] = x_ref[...] + y_ref[...]


def _cdiv(a, b):
    return -(-a // b)


def _round_up(a, b):
    return _cdiv(a, b) * b


def _sublane_min(dtype):
    itemsize = jnp.dtype(dtype).itemsize
    if itemsize >= 4:
        return 8
    if itemsize == 2:
        return 16
    return 32


def _pallas_add_2d(x2, y2, *, target_tile_bytes):
    """Elementwise add of two (rows, L) slabs. L must be a multiple of 128."""
    rows, L = x2.shape
    dtype = x2.dtype
    itemsize = jnp.dtype(dtype).itemsize
    sub_min = _sublane_min(dtype)

    # Largest tile (in rows) whose single-operand footprint is ~target_tile_bytes,
    # rounded down to the dtype's sublane packing granularity.
    tile_cap = max(sub_min, (target_tile_bytes // (L * itemsize)) // sub_min * sub_min)

    if rows <= tile_cap:
        if rows > 2 * sub_min:
            # Split into (at least) 2 blocks so the parallel axis can shard
            # across both v7x TensorCores instead of leaving one idle.
            tile_rows = _round_up(_cdiv(rows, 2), sub_min)
        else:
            # Tiny input: one full-extent block (full-extent dims are always legal).
            tile_rows = rows
    else:
        steps = _cdiv(rows, tile_cap)
        if steps % 2:  # prefer an even step count (2-TC load balance on v7x)
            steps += 1
        tile_rows = min(tile_cap, max(sub_min, _round_up(_cdiv(rows, steps), sub_min)))

    grid = (_cdiv(rows, tile_rows),)  # ragged last block is masked by Pallas
    spec = pl.BlockSpec((tile_rows, L), lambda i: (i, 0))

    tile_bytes = tile_rows * L * itemsize
    # 3 operands x 2 pipeline buffers per tile + headroom for compiler-internal scratch.
    # With defaults (4 MiB tiles) this is ~26 MiB: fits v5e/v6e (128 MiB) and v7x (64 MiB).
    vmem_limit = max(3 * 2 * tile_bytes + (2 << 20), 8 << 20)

    return pl.pallas_call(
        _add_kernel,
        out_shape=jax.ShapeDtypeStruct((rows, L), dtype),
        grid_spec=pltpu.PrefetchScalarGridSpec(
            num_scalar_prefetch=0,
            grid=grid,
            in_specs=[spec, spec],
            out_specs=spec,
        ),
        compiler_params=pltpu.CompilerParams(
            dimension_semantics=("parallel",),
            vmem_limit_bytes=vmem_limit,
        ),
        cost_estimate=pl.CostEstimate(
            flops=rows * L,
            transcendentals=0,
            bytes_accessed=3 * rows * L * itemsize,
        ),
    )(x2, y2)


def res_connect_split(x, y, *, lane_width=1024, target_tile_bytes=4 << 20):
    """Pallas implementation of ResConnect_split.forward: x + y."""
    assert x.shape == y.shape and x.dtype == y.dtype
    orig_shape = x.shape
    dtype = x.dtype
    total = x.size

    if total == 0:  # empty-input guard (avoid zero-sized BlockSpec / grid)
        return jnp.add(x, y)

    L = lane_width
    assert L % 128 == 0, "lane width must be a multiple of 128"

    xf = x.reshape(-1)  # contiguous reshape: free
    yf = y.reshape(-1)

    main = (total // L) * L  # aligned prefix handled by the big streaming kernel
    tail = total - main      # < L leftover elements

    parts = []
    if main:
        out_main = _pallas_add_2d(
            xf[:main].reshape(main // L, L),
            yf[:main].reshape(main // L, L),
            target_tile_bytes=target_tile_bytes,
        )
        parts.append(out_main.reshape(-1))
    if tail:
        # Tiny remainder (< L elements): pad to a single lane-dense block.
        # The pad/slice here touch at most ~L elements — negligible HBM traffic.
        sub_min = _sublane_min(dtype)
        t_rows = _round_up(max(1, _cdiv(tail, 128)), sub_min)
        t_padded = t_rows * 128
        xt = jnp.pad(xf[main:], (0, t_padded - tail)).reshape(t_rows, 128)
        yt = jnp.pad(yf[main:], (0, t_padded - tail)).reshape(t_rows, 128)
        out_tail = _pallas_add_2d(xt, yt, target_tile_bytes=target_tile_bytes)
        parts.append(out_tail.reshape(-1)[:tail])

    out_flat = parts[0] if len(parts) == 1 else jnp.concatenate(parts)
    return out_flat.reshape(orig_shape)


# TODO(synk): relprop (LRP backward pass) uses saved activations self.X / self.Y;
# it is not part of the forward pass and is not implemented here.


if __name__ == "__main__":
    key = jax.random.PRNGKey(0)
    kx, ky = jax.random.split(key)

    # 1) Aligned shape (total % 1024 == 0): zero-copy fast path, single full-extent block.
    shape = (2, 4, 16, 16)  # NCHW
    x = jax.random.normal(kx, shape, dtype=jnp.float32)
    y = jax.random.normal(ky, shape, dtype=jnp.float32)
    out = jax.block_until_ready(res_connect_split(x, y))
    ref = x + y
    assert out.shape == ref.shape and out.dtype == ref.dtype
    assert jnp.allclose(out, ref, atol=1e-6, rtol=1e-6)

    # 2) Tiny shape (total < 1024): exercised entirely by the tail block.
    shape2 = (2, 3, 7, 7)
    x2 = jax.random.normal(kx, shape2, dtype=jnp.float32)
    y2 = jax.random.normal(ky, shape2, dtype=jnp.float32)
    out2 = jax.block_until_ready(res_connect_split(x2, y2))
    assert jnp.allclose(out2, x2 + y2, atol=1e-6, rtol=1e-6)

    # 3) Misaligned shape (total % 1024 != 0, total > 1024): aligned prefix + tail path.
    shape3 = (2, 4, 17, 17)
    x3 = jax.random.normal(kx, shape3, dtype=jnp.float32)
    y3 = jax.random.normal(ky, shape3, dtype=jnp.float32)
    out3 = jax.block_until_ready(res_connect_split(x3, y3))
    assert jnp.allclose(out3, x3 + y3, atol=1e-6, rtol=1e-6)

    # 4) Multi-block grid with a ragged last block (rows = 20 -> 2 steps of 16 + 4 rows).
    shape4 = (5, 4, 32, 32)
    x4 = jax.random.normal(kx, shape4, dtype=jnp.float32)
    y4 = jax.random.normal(ky, shape4, dtype=jnp.float32)
    out4 = jax.block_until_ready(res_connect_split(x4, y4))
    assert jnp.allclose(out4, x4 + y4, atol=1e-6, rtol=1e-6)

    print("KERNEL_OK")
</pallas_src>

<mosaic_0001>
module attributes {stable_mosaic.version = 11 : i64} {
  func.func @_add_kernel(%arg0: i32, %arg1: memref<2x1024xf32, #tpu.memory_space<vmem>>, %arg2: memref<2x1024xf32, #tpu.memory_space<vmem>>, %arg3: memref<2x1024xf32, #tpu.memory_space<vmem>>) attributes {dimension_semantics = [#tpu.dimension_semantics<parallel>], iteration_bounds = array<i64: 1>, scalar_prefetch = 0 : i64, scratch_operands = 0 : i64, tpu.core_type = #tpu.core_type<tc>, window_params = [{transform_indices = @transform_0, window_bounds = array<i64: 2, 1024>}, {transform_indices = @transform_1, window_bounds = array<i64: 2, 1024>}, {transform_indices = @transform_2, window_bounds = array<i64: 2, 1024>}]} {
    %c0 = arith.constant 0 : index
    %c0_0 = arith.constant 0 : index
    %0 = vector.load %arg1[%c0, %c0_0] : memref<2x1024xf32, #tpu.memory_space<vmem>>, vector<2x1024xf32>
    %c0_1 = arith.constant 0 : index
    %c0_2 = arith.constant 0 : index
    %1 = vector.load %arg2[%c0_1, %c0_2] : memref<2x1024xf32, #tpu.memory_space<vmem>>, vector<2x1024xf32>
    %2 = arith.addf %0, %1 : vector<2x1024xf32>
    %c0_3 = arith.constant 0 : index
    %c0_4 = arith.constant 0 : index
    %3 = vector.load %arg3[%c0_3, %c0_4] : memref<2x1024xf32, #tpu.memory_space<vmem>>, vector<2x1024xf32>
    tpu.vector_store %arg3[%c0_3, %c0_4], %2 {strides = array<i32>} : memref<2x1024xf32, #tpu.memory_space<vmem>>, vector<2x1024xf32>,
    return
  }
  func.func @transform_0(%arg0: i32) -> (i32, i32) {
    %c0_i32 = arith.constant 0 : i32
    %c0_i32_0 = arith.constant 0 : i32
    return %arg0, %c0_i32 : i32, i32
  }
  func.func @transform_1(%arg0: i32) -> (i32, i32) {
    %c0_i32 = arith.constant 0 : i32
    %c0_i32_0 = arith.constant 0 : i32
    return %arg0, %c0_i32 : i32, i32
  }
  func.func @transform_2(%arg0: i32) -> (i32, i32) {
    %c0_i32 = arith.constant 0 : i32
    %c0_i32_0 = arith.constant 0 : i32
    return %arg0, %c0_i32 : i32, i32
  }
}

</mosaic_0001>

<bundles_post_ra>
// kernel: tpu_custom_call.1
= control target key start
LH: loop header
LB: loop body
LE: loop exit
PB: predicated region body
PF: predicated region fallthrough
CT: control target
= control target key end

     0   :  { %7 = vsyncpa [#allocation3], 0  ;;  %s189_s0 = inlined_call_operand.hbm [shape: f32[2,1024], index: 0, kind: input, shape index: {}]   ;;  %s190_s1 = inlined_call_operand.hbm [shape: f32[2,1024], index: 1, kind: input, shape index: {}]   ;;  %s191_s2 = inlined_call_operand.hbm [shape: f32[2,1024], index: 2, kind: output, shape index: {}]  }
   0x1   :  { %8 = vsyncpa [#allocation6], 0 }
   0x2   :  { %9 = vsyncpa [#allocation4], 0  ;;  %s135_s9 = smov [#allocation2]   ;;  %s136_s11 = smov [#allocation5]  }
   0x3   :  { %s16_s10 = sshll.u32 %s135_s9, 4  ;;  %s26_s12 = sshll.u32 %s136_s11, 4  ;;  %s17_s10 = int_to_ptr.vmem [resolvable:$true] %s16_s10  ;;  %s27_s12 = int_to_ptr.vmem [resolvable:$true] %s26_s12 }
   0x4   :  { %s63_s15 = scalar_lea.hbm %s189_s0, 256 }
   0x5   :  { %p64_p0 = scmp.ne.s32.totalorder %s189_s0, %s63_s15  ;;  %p67_p1 = scmp.lt.u32.totalorder %s63_s15, %s189_s0 }
   0x7   :  { %p69_p2 = pnand %p67_p1, %p64_p0 }
   0x9   :  { %72 = shalt.err (!%p69_p2)
}
   0xa   :  { %s73_s20 = scalar_lea.vmem %s17_s10, 256  ;;  %p78_p4 = scmp.lt.s32.totalorder %s17_s10, %s17_s10 }
   0xb   :  { %p74_p3 = scmp.ne.s32.totalorder %s17_s10, %s73_s20  ;;  %p79_p5 = scmp.lt.s32.totalorder %s73_s20, %s73_s20 }
   0xd   :  { %p80_p6 = por %p79_p5, %p78_p4 }
   0xf   :  { %p81_p7 = pnand %p80_p6, %p74_p3 }
  0x11   :  { %84 = shalt.err (!%p81_p7)
}
  0x12   :  { %19 = dma.hbm_to_vmem [thread:$0]  %s189_s0, 256, %s17_s10, [#allocation3]  }
  0x13   :  { %s85_s25 = scalar_lea.hbm %s190_s1, 256 }
  0x14   :  { %p86_p8 = scmp.ne.s32.totalorder %s190_s1, %s85_s25  ;;  %p89_p9 = scmp.lt.u32.totalorder %s85_s25, %s190_s1 }
  0x16   :  { %p91_p10 = pnand %p89_p9, %p86_p8 }
  0x18   :  { %94 = shalt.err (!%p91_p10)
}
  0x19   :  { %s95_s30 = scalar_lea.vmem %s27_s12, 256  ;;  %p100_p12 = scmp.lt.s32.totalorder %s27_s12, %s27_s12 }
  0x1a   :  { %p96_p11 = scmp.ne.s32.totalorder %s27_s12, %s95_s30  ;;  %p101_p13 = scmp.lt.s32.totalorder %s95_s30, %s95_s30 }
  0x1c   :  { %p102_p0 = por %p101_p13, %p100_p12 }
  0x1e   :  { %p103_p1 = pnand %p102_p0, %p96_p11 }
  0x20   :  { %106 = shalt.err (!%p103_p1)
}
  0x21   :  { %29 = dma.hbm_to_vmem [thread:$0]  %s190_s1, 256, %s27_s12, [#allocation6]  }
  0x22   :  { %129 = dma.done.wait [#allocation3], 256  }
  0x23   :  { %130 = vsyncadd [#allocation3], 4294967040 }
  0x24   :  { %131 = dma.done.wait [#allocation6], 256  }
  0x25   :  { %132 = vsyncadd [#allocation6], 4294967040  ;;  %s137_s4 = smov [#allocation7]   ;;  %v36_v0 = vld [vmem:[#allocation2] sm:$0xff]  ;;  %v38_v1 = vld [vmem:[#allocation5] sm:$0xff] }
  0x26   :  { %s50_s5 = sshll.u32 %s137_s4, 4  ;;  %v37_v2 = vld [vmem:[#allocation2 + $0x8] sm:$0xff]  ;;  %v40_v3 = vadd.f32 %v38_v1, %v36_v0  ;;  %v39_v4 = vld [vmem:[#allocation5 + $0x8] sm:$0xff]  ;;  %s51_s5 = int_to_ptr.vmem [resolvable:$true] %s50_s5 }
  0x27   :  { %v41_v5 = vadd.f32 %v39_v4, %v37_v2  ;;  %s107_s6 = scalar_lea.vmem %s51_s5, 256  ;;  %p112_p3 = scmp.lt.s32.totalorder %s51_s5, %s51_s5 }
  0x28   :  { %42 = vst [vmem:[#allocation7] sm:$0xff] %v40_v3  ;;  %p108_p2 = scmp.ne.s32.totalorder %s51_s5, %s107_s6  ;;  %p113_p4 = scmp.lt.s32.totalorder %s107_s6, %s107_s6 }
  0x29   :  { %43 = vst [vmem:[#allocation7 + $0x8] sm:$0xff] %v41_v5 }
  0x2a   :  { %p114_p5 = por %p113_p4, %p112_p3 }
  0x2c   :  { %p115_p6 = pnand %p114_p5, %p108_p2 }
  0x2e   :  { %118 = shalt.err (!%p115_p6)
}
  0x2f   :  { %s119_s8 = scalar_lea.hbm %s191_s2, 256 }
  0x30   :  { %p120_p7 = scmp.ne.s32.totalorder %s191_s2, %s119_s8  ;;  %p123_p8 = scmp.lt.u32.totalorder %s119_s8, %s191_s2 }
  0x32   :  { %p125_p9 = pnand %p123_p8, %p120_p7 }
  0x34   :  { %128 = shalt.err (!%p125_p9)
}
  0x35   :  { %53 = dma.vmem_to_hbm [thread:$0]  %s51_s5, 256, %s191_s2, [#allocation4]  }
  0x36   :  { %133 = dma.done.wait [#allocation4], 256  }
  0x37   :  { %134 = vsyncadd [#allocation4], 4294967040 }
  0x38   :  { %57 = vsyncpa [#allocation3], 1 }
  0x39   :  { %58 = vsyncpa [#allocation6], 1 }
  0x3a   :  { %59 = vsyncpa [#allocation4], 1 }

</bundles_post_ra>
